<compile_context>
chip_gen: v6e
topology: v6e:2x2x1
jax: 0.10.0
libtpu: 0.0.40
codegen_flags: <defaults>
</compile_context>

<pallas_src>
import functools

import jax
import jax.numpy as jnp
from jax.experimental import pallas as pl
from jax.experimental.pallas import tpu as pltpu


def _vq_kernel(x_ref, nemb2_ref, e2_ref,
               quant_ref, idx_ref, sqerr_ref, counts_ref, *, t_chunk):
    """One grid step: a (TB, C, T_HW) channel-major slab.

    Inputs:
      x_ref     : (TB, D, T_HW)  pixels, channel-major, model dtype
      nemb2_ref : (K, D)         -2 * codebook
      e2_ref    : (K, 1)         precomputed ||e_k||^2 (f32)
    Outputs (each written exactly once per grid cell -> parallel-safe):
      quant_ref : (TB, D, T_HW)  quantized pixels (model dtype)
      idx_ref   : (TB, 1, T_HW)  argmin code index per pixel (lane-dense i32)
      sqerr_ref : (1, 1, 1, 1)   per-step sum of (quantized - x)^2
      counts_ref: (1, 1, K, 1)   per-step per-code counts
    """
    tb, _, t_hw = x_ref.shape
    num_k = nemb2_ref.shape[0]
    n_chunks = t_hw // t_chunk

    nemb2 = nemb2_ref[...]                               # (K, D) == -2 * E
    emb_f = nemb2.astype(jnp.float32) * (-0.5)           # exact recovery of E
    e2 = e2_ref[...]                                     # (K, 1) f32
    k_iota = jax.lax.broadcasted_iota(jnp.int32, (num_k, t_chunk), 0)

    def chunk_body(i, carry):
        sqerr, counts = carry
        b = i // n_chunks
        if n_chunks == 1:
            x = x_ref[b]                                 # (D, Tc) full lane slab
        else:
            off = pl.multiple_of((i - b * n_chunks) * t_chunk, 128)
            x = x_ref[b, :, pl.ds(off, t_chunk)]         # (D, Tc)
        xf = x.astype(jnp.float32)

        # argmin_k ||x - e_k||^2 == argmin_k (||e_k||^2 - 2 e_k.x); the per-pixel
        # ||x||^2 term is constant and dropped; the -2 is folded into nemb2 so
        # the hot (K, Tc) slab costs a single VALU add.
        xe = jnp.dot(nemb2, x, preferred_element_type=jnp.float32)   # (K,Tc) MXU
        dist = xe + e2                                                # (K,Tc)

        # first-index tie-breaking (matches torch.argmin)
        min_d = jnp.min(dist, axis=0, keepdims=True)                  # (1,Tc)
        idx = jnp.min(jnp.where(dist == min_d, k_iota, num_k),
                      axis=0, keepdims=True)                          # (1,Tc) i32
        onehot = (k_iota == idx).astype(jnp.float32)                  # (K,Tc)

        # quantized = E^T @ onehot : contract axis 0 of E directly (TN matmul),
        # no separate transposed-codebook input needed.
        quant = jax.lax.dot_general(
            emb_f, onehot, dimension_numbers=(((0,), (0,)), ((), ())),
            preferred_element_type=jnp.float32)                       # (D,Tc) MXU

        if n_chunks == 1:
            quant_ref[b] = quant.astype(quant_ref.dtype)
            idx_ref[b] = idx
        else:
            quant_ref[b, :, pl.ds(off, t_chunk)] = quant.astype(quant_ref.dtype)
            idx_ref[b, :, pl.ds(off, t_chunk)] = idx

        diff = quant - xf
        sqerr = sqerr + jnp.sum(diff * diff).reshape(1, 1)
        counts = counts + jnp.sum(onehot, axis=1, keepdims=True)      # (K,1)
        return sqerr, counts

    n_iters = tb * n_chunks
    init = (jnp.zeros((1, 1), jnp.float32),
            jnp.zeros((num_k, 1), jnp.float32))
    if n_iters == 1:
        sqerr, counts = chunk_body(0, init)
    else:
        sqerr, counts = jax.lax.fori_loop(0, n_iters, chunk_body, init,
                                          unroll=(n_iters <= 8))

    sqerr_ref[0, 0] = sqerr
    counts_ref[0, 0] = counts


def _pick_tile_hw(hw, cap):
    """Largest lane-friendly tile of the pixel axis: a multiple of 128 that
    divides hw, capped at `cap`; falls back to the full axis."""
    if hw <= cap:
        return hw
    t = (cap // 128) * 128
    while t >= 128:
        if hw % t == 0:
            return t
        t -= 128
    return hw


def _divisor_at_most(n, cap):
    cap = max(1, min(int(cap), n))
    for d in range(cap, 0, -1):
        if n % d == 0:
            return d
    return 1


def _tpu_budgets():
    """(per-step HBM traffic target, VMEM capacity), scaled by TPU generation.

    v7x (64 MiB VMEM, ~3.2 TB/s HBM) needs ~2-4 MiB/step to amortise the fixed
    per-step overhead; v5e/v6e are near roofline around 0.5-1 MiB/step.
    """
    vmem_cap = 128 << 20
    try:
        vmem_cap = int(pltpu.get_tpu_info().vmem_capacity_bytes)
    except Exception:
        pass
    target = (2 << 20) if vmem_cap <= (64 << 20) else (1 << 20)
    return target, vmem_cap


@functools.partial(jax.jit, static_argnames=("commitment_cost",))
def vq_ema_forward(x_nchw, embedding, *, commitment_cost=0.25):
    """Functional (eval mode) forward of VectorQuantizerEMA.

    Args:
      x_nchw:    (B, C, H, W) input, C == embedding_dim (dtype preserved).
      embedding: (K, D) codebook, D == C.
    Returns:
      loss (scalar), quantized (B, C, H, W), perplexity (scalar),
      encoding_indices (N, 1) int32 with N = B*H*W (NHWC row order, matching
      the PyTorch module).
    """
    B, C, H, W = x_nchw.shape
    K, D = embedding.shape
    assert D == C
    HW = H * W
    N = B * HW
    itemsize = jnp.dtype(x_nchw.dtype).itemsize

    # ---- generation-aware tile selection ----------------------------------
    target_bytes, vmem_cap = _tpu_budgets()
    bytes_per_pixel = 2 * C * itemsize + 4          # x in + quant out + idx out
    target_px = max(target_bytes // bytes_per_pixel, 128)

    t_hw = _pick_tile_hw(HW, target_px)
    n_hw = HW // t_hw
    tb = _divisor_at_most(B, max(target_px // t_hw, 1))
    # megacore: keep >= 2 grid steps whenever the problem allows it
    if (B // tb) * n_hw < 2:
        if B > 1:
            tb = _divisor_at_most(B, B // 2)
        elif t_hw % 256 == 0:
            t_hw //= 2
            n_hw = 2
    nb = B // tb
    # inner pixel-chunk: keep the (K, Tc) dist/onehot intermediates small
    t_chunk = _pick_tile_hw(t_hw, 1024)

    # ---- wrapper-side prep (all tiny or free) ------------------------------
    x = x_nchw.reshape(B, C, HW)                         # free reshape, keeps dtype
    emb_f32 = embedding.astype(jnp.float32)
    nemb2 = -2.0 * embedding                             # folded scale (exact)
    e2 = jnp.sum(emb_f32 * emb_f32, axis=1, keepdims=True)   # (K, 1) f32

    # ---- VMEM audit: raise scoped limit only if needed ---------------------
    io_block_bytes = tb * t_hw * (2 * C * itemsize + 4)
    vmem_est = 2 * io_block_bytes + 8 * K * t_chunk * 4 + 4 * K * (D + 1) * 4
    vmem_limit = None
    if vmem_est > (30 << 20):
        vmem_limit = int(min(vmem_cap - (8 << 20), 2 * vmem_est))

    grid = (nb, n_hw)
    quant, idx, sqerr_parts, count_parts = pl.pallas_call(
        functools.partial(_vq_kernel, t_chunk=t_chunk),
        out_shape=(
            jax.ShapeDtypeStruct((B, C, HW), x.dtype),
            jax.ShapeDtypeStruct((B, 1, HW), jnp.int32),
            jax.ShapeDtypeStruct((nb, n_hw, 1, 1), jnp.float32),
            jax.ShapeDtypeStruct((nb, n_hw, K, 1), jnp.float32),
        ),
        grid=grid,
        in_specs=[
            pl.BlockSpec((tb, C, t_hw), lambda b, j: (b, 0, j)),
            pl.BlockSpec((K, D), lambda b, j: (0, 0)),
            pl.BlockSpec((K, 1), lambda b, j: (0, 0)),
        ],
        out_specs=(
            pl.BlockSpec((tb, C, t_hw), lambda b, j: (b, 0, j)),
            pl.BlockSpec((tb, 1, t_hw), lambda b, j: (b, 0, j)),
            pl.BlockSpec((1, 1, 1, 1), lambda b, j: (b, j, 0, 0)),
            pl.BlockSpec((1, 1, K, 1), lambda b, j: (b, j, 0, 0)),
        ),
        compiler_params=pltpu.CompilerParams(
            dimension_semantics=("parallel", "parallel"),
            vmem_limit_bytes=vmem_limit),
    )(x, nemb2, e2)

    # e_latent_loss = mse(quantized.detach(), inputs); loss = beta * mse
    e_latent_loss = jnp.sum(sqerr_parts) / (N * D)
    loss = commitment_cost * e_latent_loss

    # straight-through: forward value equals quantized; already NCHW layout.
    quant_nchw = quant.reshape(B, C, H, W)

    counts = jnp.sum(count_parts, axis=(0, 1, 3))        # (K,)
    avg_probs = counts / N
    perplexity = jnp.exp(-jnp.sum(avg_probs * jnp.log(avg_probs + 1e-10)))

    # (N, 1) in NHWC row order, matching the PyTorch module.  (Callers that can
    # consume (B, HW) directly avoid the small int relayout this implies.)
    encoding_indices = idx.reshape(N, 1)
    return loss, quant_nchw, perplexity, encoding_indices


def _reference(x_nchw, embedding, commitment_cost):
    """Pure-JAX reference (mirrors the PyTorch forward) for validation."""
    B, C, H, W = x_nchw.shape
    x = jnp.transpose(x_nchw, (0, 2, 3, 1)).astype(jnp.float32)
    flat = x.reshape(-1, C)
    emb = embedding.astype(jnp.float32)
    dist = (jnp.sum(flat ** 2, axis=1, keepdims=True)
            + jnp.sum(emb ** 2, axis=1)
            - 2.0 * flat @ emb.T)
    idx = jnp.argmin(dist, axis=1)
    onehot = jax.nn.one_hot(idx, emb.shape[0], dtype=jnp.float32)
    quant = (onehot @ emb).reshape(x.shape)
    e_latent_loss = jnp.mean((quant - x) ** 2)
    loss = commitment_cost * e_latent_loss
    avg_probs = jnp.mean(onehot, axis=0)
    perplexity = jnp.exp(-jnp.sum(avg_probs * jnp.log(avg_probs + 1e-10)))
    return loss, jnp.transpose(quant, (0, 3, 1, 2)), perplexity, idx[:, None]


if __name__ == "__main__":
    # Module hyperparameters (synthetic, deterministic init)
    num_embeddings = 16
    embedding_dim = 4      # == channels
    commitment_cost = 0.25

    key = jax.random.PRNGKey(0)
    k_emb, k_x = jax.random.split(key)
    embedding = jax.random.normal(k_emb, (num_embeddings, embedding_dim),
                                  dtype=jnp.float32)  # embedding.weight.normal_()
    x = jax.random.normal(k_x, (2, embedding_dim, 16, 16), dtype=jnp.float32)

    loss, quantized, perplexity, indices = vq_ema_forward(
        x, embedding, commitment_cost=commitment_cost)
    jax.block_until_ready((loss, quantized, perplexity, indices))

    # lightweight correctness check against pure-JAX reference
    r_loss, r_quant, r_perp, r_idx = _reference(x, embedding, commitment_cost)
    assert jnp.allclose(loss, r_loss, atol=1e-5), (loss, r_loss)
    assert jnp.allclose(quantized, r_quant, atol=1e-5)
    assert jnp.allclose(perplexity, r_perp, atol=1e-4)
    assert jnp.array_equal(indices.astype(jnp.int32), r_idx.astype(jnp.int32))

    print("KERNEL_OK")
</pallas_src>

<mosaic_0001>
module attributes {stable_mosaic.version = 11 : i64} {
  func.func @_vq_kernel(%arg0: i32, %arg1: i32, %arg2: memref<1x4x256xf32, #tpu.memory_space<vmem>>, %arg3: memref<16x4xf32, #tpu.memory_space<vmem>>, %arg4: memref<16x1xf32, #tpu.memory_space<vmem>>, %arg5: memref<1x4x256xf32, #tpu.memory_space<vmem>>, %arg6: memref<1x1x256xi32, #tpu.memory_space<vmem>>, %arg7: memref<1x1x1x1xf32, #tpu.memory_space<vmem>>, %arg8: memref<1x1x16x1xf32, #tpu.memory_space<vmem>>) attributes {dimension_semantics = [#tpu.dimension_semantics<parallel>, #tpu.dimension_semantics<parallel>], iteration_bounds = array<i64: 2, 1>, scalar_prefetch = 0 : i64, scratch_operands = 0 : i64, tpu.core_type = #tpu.core_type<tc>, window_params = [{transform_indices = @transform_0, window_bounds = array<i64: 1, 4, 256>}, {pipeline_mode = #tpu.pipeline_mode<synchronous>, transform_indices = @transform_1, window_bounds = array<i64: 16, 4>}, {pipeline_mode = #tpu.pipeline_mode<synchronous>, transform_indices = @transform_2, window_bounds = array<i64: 16, 1>}, {transform_indices = @transform_3, window_bounds = array<i64: 1, 4, 256>}, {transform_indices = @transform_4, window_bounds = array<i64: 1, 1, 256>}, {transform_indices = @transform_5, window_bounds = array<i64: 1, 1, 1, 1>}, {transform_indices = @transform_6, window_bounds = array<i64: 1, 1, 16, 1>}]} {
    %c0 = arith.constant 0 : index
    %c0_0 = arith.constant 0 : index
    %0 = vector.load %arg3[%c0, %c0_0] : memref<16x4xf32, #tpu.memory_space<vmem>>, vector<16x4xf32>
    %cst = arith.constant -5.000000e-01 : f32
    %1 = vector.broadcast %cst : f32 to vector<16x4xf32>
    %2 = arith.mulf %0, %1 : vector<16x4xf32>
    %c0_1 = arith.constant 0 : index
    %c0_2 = arith.constant 0 : index
    %3 = vector.load %arg4[%c0_1, %c0_2] : memref<16x1xf32, #tpu.memory_space<vmem>>, vector<16x1xf32>
    %4 = tpu.iota {dimensions = array<i32: 0>} : vector<16x256xi32>
    %cst_3 = arith.constant 0.000000e+00 : f32
    %5 = vector.broadcast %cst_3 : f32 to vector<1x1xf32>
    %cst_4 = arith.constant 0.000000e+00 : f32
    %6 = vector.broadcast %cst_4 : f32 to vector<16x1xf32>
    %c0_5 = arith.constant 0 : index
    %c0_6 = arith.constant 0 : index
    %c0_7 = arith.constant 0 : index
    %7 = vector.load %arg2[%c0_5, %c0_6, %c0_7] : memref<1x4x256xf32, #tpu.memory_space<vmem>>, vector<1x4x256xf32>
    %8 = vector.shape_cast %7 : vector<1x4x256xf32> to vector<4x256xf32>
    %cst_8 = arith.constant dense<0.000000e+00> : vector<16x256xf32>
    %9 = tpu.matmul %0, %8, %cst_8 {dimension_numbers = #tpu.dot_dimension_numbers<[1], [0], [0], [1], [0, 0, 1, 1], [], []>} : vector<16x4xf32>, vector<4x256xf32>, vector<16x256xf32> -> vector<16x256xf32>
    %10 = vector.broadcast %3 : vector<16x1xf32> to vector<16x256xf32>
    %11 = arith.addf %9, %10 : vector<16x256xf32>
    %cst_9 = arith.constant dense<0x7F800000> : vector<256xf32>
    %12 = vector.multi_reduction <minimumf>, %11, %cst_9 [0] : vector<16x256xf32> to vector<256xf32>
    %13 = vector.shape_cast %12 : vector<256xf32> to vector<1x256xf32>
    %14 = vector.broadcast %13 : vector<1x256xf32> to vector<16x256xf32>
    %15 = arith.cmpf oeq, %11, %14 : vector<16x256xf32>
    %c16_i32 = arith.constant 16 : i32
    %16 = vector.broadcast %c16_i32 : i32 to vector<16x256xi32>
    %17 = arith.select %15, %4, %16 : vector<16x256xi1>, vector<16x256xi32>
    %cst_10 = arith.constant dense<2147483647> : vector<256xi32>
    %18 = vector.multi_reduction <minsi>, %17, %cst_10 [0] : vector<16x256xi32> to vector<256xi32>
    %19 = vector.shape_cast %18 : vector<256xi32> to vector<1x256xi32>
    %20 = vector.broadcast %19 : vector<1x256xi32> to vector<16x256xi32>
    %21 = arith.cmpi eq, %4, %20 : vector<16x256xi32>
    %22 = arith.extui %21 : vector<16x256xi1> to vector<16x256xi32>
    %23 = arith.sitofp %22 : vector<16x256xi32> to vector<16x256xf32>
    %cst_11 = arith.constant dense<0.000000e+00> : vector<4x256xf32>
    %24 = tpu.matmul %2, %23, %cst_11 {dimension_numbers = #tpu.dot_dimension_numbers<[0], [0], [1], [1], [0, 1, 1, 1], [], []>} : vector<16x4xf32>, vector<16x256xf32>, vector<4x256xf32> -> vector<4x256xf32>
    %c0_12 = arith.constant 0 : index
    %c0_13 = arith.constant 0 : index
    %c0_14 = arith.constant 0 : index
    %25 = vector.load %arg5[%c0_12, %c0_13, %c0_14] : memref<1x4x256xf32, #tpu.memory_space<vmem>>, vector<1x4x256xf32>
    %26 = vector.shape_cast %25 : vector<1x4x256xf32> to vector<4x256xf32>
    %27 = vector.shape_cast %24 : vector<4x256xf32> to vector<1x4x256xf32>
    tpu.vector_store %arg5[%c0_12, %c0_13, %c0_14], %27 {strides = array<i32>} : memref<1x4x256xf32, #tpu.memory_space<vmem>>, vector<1x4x256xf32>,
    %c0_15 = arith.constant 0 : index
    %c0_16 = arith.constant 0 : index
    %c0_17 = arith.constant 0 : index
    %28 = vector.load %arg6[%c0_15, %c0_16, %c0_17] : memref<1x1x256xi32, #tpu.memory_space<vmem>>, vector<1x1x256xi32>
    %29 = vector.shape_cast %28 : vector<1x1x256xi32> to vector<1x256xi32>
    %30 = vector.shape_cast %19 : vector<1x256xi32> to vector<1x1x256xi32>
    tpu.vector_store %arg6[%c0_15, %c0_16, %c0_17], %30 {strides = array<i32>} : memref<1x1x256xi32, #tpu.memory_space<vmem>>, vector<1x1x256xi32>,
    %31 = arith.subf %24, %8 : vector<4x256xf32>
    %32 = arith.mulf %31, %31 : vector<4x256xf32>
    %33 = vector.shape_cast %32 : vector<4x256xf32> to vector<1x4x256xf32>
    %cst_18 = arith.constant dense<0.000000e+00> : vector<1xf32>
    %34 = vector.multi_reduction <add>, %33, %cst_18 [1, 2] : vector<1x4x256xf32> to vector<1xf32>
    %35 = vector.shape_cast %34 : vector<1xf32> to vector<1x1x1xf32>
    %36 = vector.extract %35[0, 0, 0] : f32 from vector<1x1x1xf32>
    %37 = vector.broadcast %36 : f32 to vector<1x1xf32>
    %38 = arith.addf %5, %37 : vector<1x1xf32>
    %cst_19 = arith.constant dense<0.000000e+00> : vector<16xf32>
    %39 = vector.multi_reduction <add>, %23, %cst_19 [1] : vector<16x256xf32> to vector<16xf32>
    %40 = vector.shape_cast %39 : vector<16xf32> to vector<16x1xf32>
    %41 = arith.addf %6, %40 : vector<16x1xf32>
    %c0_20 = arith.constant 0 : index
    %c0_21 = arith.constant 0 : index
    %c0_22 = arith.constant 0 : index
    %c0_23 = arith.constant 0 : index
    %42 = vector.load %arg7[%c0_20, %c0_21, %c0_22, %c0_23] : memref<1x1x1x1xf32, #tpu.memory_space<vmem>>, vector<1x1x1x1xf32>
    %43 = vector.shape_cast %42 : vector<1x1x1x1xf32> to vector<1x1xf32>
    %44 = vector.shape_cast %38 : vector<1x1xf32> to vector<1x1x1x1xf32>
    tpu.vector_store %arg7[%c0_20, %c0_21, %c0_22, %c0_23], %44 {strides = array<i32>} : memref<1x1x1x1xf32, #tpu.memory_space<vmem>>, vector<1x1x1x1xf32>,
    %c0_24 = arith.constant 0 : index
    %c0_25 = arith.constant 0 : index
    %c0_26 = arith.constant 0 : index
    %c0_27 = arith.constant 0 : index
    %45 = vector.load %arg8[%c0_24, %c0_25, %c0_26, %c0_27] : memref<1x1x16x1xf32, #tpu.memory_space<vmem>>, vector<1x1x16x1xf32>
    %46 = vector.shape_cast %45 : vector<1x1x16x1xf32> to vector<16x1xf32>
    %47 = vector.shape_cast %41 : vector<16x1xf32> to vector<1x1x16x1xf32>
    tpu.vector_store %arg8[%c0_24, %c0_25, %c0_26, %c0_27], %47 {strides = array<i32>} : memref<1x1x16x1xf32, #tpu.memory_space<vmem>>, vector<1x1x16x1xf32>,
    return
  }
  func.func @transform_0(%arg0: i32, %arg1: i32) -> (i32, i32, i32) {
    %c0_i32 = arith.constant 0 : i32
    %c0_i32_0 = arith.constant 0 : i32
    return %arg0, %c0_i32, %arg1 : i32, i32, i32
  }
  func.func @transform_1(%arg0: i32, %arg1: i32) -> (i32, i32) {
    %c0_i32 = arith.constant 0 : i32
    %c0_i32_0 = arith.constant 0 : i32
    %c0_i32_1 = arith.constant 0 : i32
    return %c0_i32, %c0_i32_0 : i32, i32
  }
  func.func @transform_2(%arg0: i32, %arg1: i32) -> (i32, i32) {
    %c0_i32 = arith.constant 0 : i32
    %c0_i32_0 = arith.constant 0 : i32
    %c0_i32_1 = arith.constant 0 : i32
    return %c0_i32, %c0_i32_0 : i32, i32
  }
  func.func @transform_3(%arg0: i32, %arg1: i32) -> (i32, i32, i32) {
    %c0_i32 = arith.constant 0 : i32
    %c0_i32_0 = arith.constant 0 : i32
    return %arg0, %c0_i32, %arg1 : i32, i32, i32
  }
  func.func @transform_4(%arg0: i32, %arg1: i32) -> (i32, i32, i32) {
    %c0_i32 = arith.constant 0 : i32
    %c0_i32_0 = arith.constant 0 : i32
    return %arg0, %c0_i32, %arg1 : i32, i32, i32
  }
  func.func @transform_5(%arg0: i32, %arg1: i32) -> (i32, i32, i32, i32) {
    %c0_i32 = arith.constant 0 : i32
    %c0_i32_0 = arith.constant 0 : i32
    %c0_i32_1 = arith.constant 0 : i32
    return %arg0, %arg1, %c0_i32, %c0_i32_0 : i32, i32, i32, i32
  }
  func.func @transform_6(%arg0: i32, %arg1: i32) -> (i32, i32, i32, i32) {
    %c0_i32 = arith.constant 0 : i32
    %c0_i32_0 = arith.constant 0 : i32
    %c0_i32_1 = arith.constant 0 : i32
    return %arg0, %arg1, %c0_i32, %c0_i32_0 : i32, i32, i32, i32
  }
}

</mosaic_0001>

<bundles_post_ra>
// kernel: vq_ema_forward.1
= control target key start
LH: loop header
LB: loop body
LE: loop exit
PB: predicated region body
PF: predicated region fallthrough
CT: control target
= control target key end

     0   :  { %12 = vsyncpa [#allocation3], 0  ;;  %s1297_s0 = inlined_call_operand.vmem [shape: f32[2,4,256], index: 0, kind: input, shape index: {}]   ;;  %s1298_s1 = inlined_call_operand.vmem [shape: f32[16,4], index: 1, kind: input, shape index: {}]   ;;  %s1299_s2 = inlined_call_operand.vmem [shape: f32[16,1], index: 2, kind: input, shape index: {}]   ;;  %s1300_s3 = inlined_call_operand.vmem [shape: f32[2,4,256], index: 3, kind: output, shape index: {0}]   ;;  %s1301_s4 = inlined_call_operand.hbm [shape: s32[2,1,256], index: 4, kind: output, shape index: {1}]   ;;  %s1302_s5 = inlined_call_operand.vmem [shape: f32[2,1,1,1], index: 5, kind: output, shape index: {2}]   ;;  %s1303_s6 = inlined_call_operand.vmem [shape: f32[2,1,16,1], index: 6, kind: output, shape index: {3}]  }
   0x1   :  { %14 = vsyncpa [#allocation3 + $0x1], 0  ;;  %s1120_s21 = smov 0   ;;  %s1122_s22 = smov 0  }
   0x2   :  { %s1124_s23 = smov 0   ;;  %s1126_s24 = smov 0  }
   0x3   :  { %s1128_s25 = smov 0   ;;  %s1130_s26 = smov 0  }
   0x4 LB: > { %s905_s27 = sadd.s32 4294967295, %s1078_s26   ;;  %s906_s28 = sadd.s32 4294967294, %s1078_s26   ;;  %s1078_s26 = sphi %s1130_s26, %s20_s26   ;;  %s1074_s25 = sphi %s1128_s25, %s1310_s25   ;;  %s1070_s24 = sphi %s1126_s24, %s1309_s24   ;;  %s1066_s23 = sphi %s1124_s23, %s1308_s23   ;;  %s1062_s22 = sphi %s1122_s22, %s1307_s22   ;;  %s1058_s21 = sphi %s1120_s21, %s1306_s21  }
   0x5   : > { %s32_s29 = sadd.s32 1, %s1074_s25  ;;  %s139_s30 = sadd.s32 1, %s1066_s23 }
   0x6   : > { %p34_p0 = scmp.ge.s32.totalorder %s32_s29, 2  ;;  %p149_p1 = scmp.ne.s32.totalorder %s1066_s23, %s1062_s22 }
   0x7   : > { %p150_p2 = scmp.eq.s32.totalorder %s905_s27, 1  ;;  %p155_p3 = scmp.ne.s32.totalorder %s1062_s22, %s1058_s21 }
   0x8   : > { %s1312_s29 = smov (%p34_p0, %s32_s29), 0  ;;  %p156_p5 = scmp.eq.s32.totalorder %s906_s28, 1 }
   0x9   : > { %p1160_p4 = por %p150_p2, %p149_p1  ;;  %s134_s8 = ssub.s32 %s1074_s25, %s1312_s29 }
   0xa   : > { %p909_p6 = scmp.ge.s32.totalorder %s1078_s26, 1  ;;  %p137_p7 = scmp.eq.s32.totalorder %s134_s8, 0 }
   0xb   : > { %p1167_p8 = por %p156_p5, %p155_p3  ;;  %p249_p9 = scmp.lt.s32.totalorder %s1078_s26, 3 }
   0xc   : > { %s1173_s10 = scalar_select %p137_p7, %s1066_s23, %s139_s30  }
   0xd   : > { %p250_p10 = pnand %p909_p6, %p249_p9 }
   0xe   : > { %p308_p11 = scmp.lt.s32.totalorder (!%p250_p10), %s1070_s24, 1  ;;  %s285_s8 = sand.u32 (!%p250_p10), 1, %s1062_s22  }
   0xf   : > { %253 = sbr.rel (%p250_p10) target bundleno = 670 (0x29e), region = 32  ;;  %s1222_s11 = sshll.u32 (!%p250_p10), %s285_s8, 1 }
  0x10   : > { %s287_s12 = scalar_lea.vmem (!%p250_p10), [#allocation2], %s1222_s11  ;;  %s938_s28 = sshll.u32 (!%p250_p10), %s1070_s24, 5 }
  0x11   : > { %s684_s14 = scalar_lea.sflag (!%p250_p10), [#allocation3], %s285_s8  ;;  %s1084_s19 = smov (!%p250_p10), [#allocation2]  }
  0x12   : > { %s1006_s20 = sshll.u32 (!%p250_p10), %s1084_s19, 4  ;;  %s1007_s20 = int_to_ptr.vmem [resolvable:$false] %s1006_s20 }
  0x14   : > { %v343_v0 = vld [vmem:[%s1298_s1] sm:$0xff]  ;;  %v1080_v1 = vmov 0.0   ;;  %s1185_s15 = scalar_select %p308_p11, %s1070_s24, 1  ;;  %v344_v4 = vld [vmem:[%s1298_s1 + $0x8] sm:$0xff]  ;;  %v1081_v5 = vmov 0   ;;  %vm372_vm0 = vcmask 1043456   ;;  %v349_v23 = vlaneseq }
  0x15   : > { %441 = vmatprep.mubr.f32.mxu0 %v1080_v1  ;;  %v347_v2 = vld [vmem:[%s1299_s2] sm:$0xff]  ;;  %v345_v3 = vmul.f32 -0.5, %v343_v0  ;;  %610 = vmatprep.mubr.f32.mxu1 %v1080_v1  ;;  %v346_v6 = vmul.f32 -0.5, %v344_v4  ;;  %v348_v7 = vld [vmem:[%s1299_s2 + $0x8] sm:$0xff]  ;;  %vm365_vm1 = vcmask 31744   ;;  %v1083_v61 = vmov 1.0  }
  0x16   : > { %1000 = vset.pattern.permute.xlu0 %v1081_v5  ;;  %s935_s18 = sshll.u32 %s1185_s15, 3  ;;  %v1211_v28 = vshrl.u32 %v349_v23, 7  ;;  %v1082_v47 = vmov 1966171168   ;;  %s937_s13 = sshll.u32 %s1185_s15, 4 }
  0x17   : > { %355 = vperm.xlu0 %1000, %v347_v2   ;;  %510 = vxpose.xlu1.b32.start [1/2] (short) (narrow) %v345_v3, 8  ;;  %s315_s30 = scalar_lea.vmem %s1297_s0, %s935_s18  ;;  %v624_v48 = vunpack.c.l.s4 %v1082_v47  ;;  %s1238_s17 = scalar_lea.vmem %s1303_s6, %s937_s13 }
  0x18   : > { %v1199_v8 = vld [vmem:[%s315_s30] sm:$0xff]  ;;  %v351_v33 = vadd.s32 8, %v1211_v28  ;;  %s325_s27 = scalar_lea.vmem %s1300_s3, %s935_s18  ;;  %s719_s30 = sshll.u32 %s287_s12, 4  ;;  %s720_s30 = int_to_ptr.vmem [resolvable:$true] %s719_s30 }
  0x19   : > { %v1203_v9 = vcombine.high %v1199_v8, %v1199_v8  ;;  %v625_v53 = vunpack.c.0.s8 %v624_v48  ;;  %s717_s13 = scalar_lea.hbm %s1301_s4, %s938_s28  ;;  %s1002_s16 = scalar_lea.vmem %s720_s30, 32 }
  0x1a   : > { %p1003_p12 = scmp.ne.s32.totalorder %s720_s30, %s1002_s16  ;;  %p1009_p1 = scmp.lt.s32.totalorder %s720_s30, %s1007_s20 }
  0x1b   : > { %360 = vperm.xlu0 %1000, %v348_v7   ;;  %511 = vxpose.xlu1.b32.end [2/2] (short) (narrow) %v346_v6, 8  ;;  %v628_v57 = vsub.s32 %v625_v53, %v1211_v28 }
  0x1c   : > { %917 = vmatprep.subr.msk.mxu0 %vm372_vm0, %v1203_v9  ;;  %p1004_p13 = pnand %p1003_p12, %p1160_p4 }
  0x1d   : > { %918 = vmatpush1.msk.msra.mxu0 %vm372_vm0, %v1199_v8 }
  0x1e   : > { %919 = vmatmul.mubr.msk.f32.vlgmr.msra.gmra.mxu0 %vm365_vm1, %v343_v0  ;;  %p1005_p0 = pneg %p1004_p13 }
  0x1f   : > { %447 = vmatprep.mubr.f32.mxu0 %v1080_v1 }
  0x22   : > { %920 = vmatmul.mubr.msk.f32.gmra.mxu0 %vm365_vm1, %v344_v4 }
  0x92   : > { %v356_v10 = vpop.permute.xlu0 %355 }
  0x93   : > { %v526_v3 = vpop.trf.xlu1 }
  0x96   : > { %v361_v13 = vpop.permute.xlu0 %360 }
  0xde   : > { %v443_v11 = vpop.f32.mrf.mxu0 }
  0xdf   : > { %v444_v15 = vadd.f32 %v443_v11, %v356_v10 }
  0xe0   : > { %v445_v12 = vpop.f32.mrf.mxu0 }
  0xe1   : > { %v446_v18 = vadd.f32 %v445_v12, %v356_v10 }
  0xe2   : > { %v449_v14 = vpop.f32.mrf.mxu0 }
  0xe3   : > { %v450_v16 = vadd.f32 %v449_v14, %v361_v13 }
  0xe4   : > { %v451_v17 = vpop.f32.mrf.mxu0 }
  0xe5   : > { %v454_v19 = vmin.f32 %v444_v15, %v450_v16  ;;  %v452_v20 = vadd.f32 %v451_v17, %v361_v13 }
  0xe7   : > { %v455_v21 = vrot.slane %v454_v19, 4  ;;  %v461_v22 = vmin.f32 %v446_v18, %v452_v20 }
  0xe9   : > { %v456_v24 = vmin.f32 %v454_v19, %v455_v21  ;;  %v462_v25 = vrot.slane %v461_v22, 4 }
  0xeb   : > { %v457_v26 = vrot.slane %v456_v24, 2  ;;  %v463_v27 = vmin.f32 %v461_v22, %v462_v25 }
  0xed   : > { %v458_v29 = vmin.f32 %v456_v24, %v457_v26  ;;  %v464_v30 = vrot.slane %v463_v27, 2 }
  0xef   : > { %v459_v31 = vrot.slane %v458_v29, 1  ;;  %v465_v32 = vmin.f32 %v463_v27, %v464_v30 }
  0xf1   : > { %v460_v34 = vmin.f32 %v458_v29, %v459_v31  ;;  %v466_v35 = vrot.slane %v465_v32, 1 }
  0xf3   : > { %vm468_vm2 = vcmp.eq.f32.partialorder %v444_v15, %v460_v34  ;;  %vm470_vm3 = vcmp.eq.f32.partialorder %v450_v16, %v460_v34  ;;  %v467_v36 = vmin.f32 %v465_v32, %v466_v35 }
  0xf4   : > { %v472_v37 = vsel %vm468_vm2, %v1211_v28, 16  ;;  %v474_v38 = vsel %vm470_vm3, %v351_v33, 16  ;;  %vm542_vm3 = vcmask 130048  }
  0xf5   : > { %vm476_vm4 = vcmp.lt.s32.totalorder %v472_v37, %v474_v38  ;;  %vm469_vm5 = vcmp.eq.f32.partialorder %v446_v18, %v467_v36  ;;  %vm471_vm6 = vcmp.eq.f32.partialorder %v452_v20, %v467_v36 }
  0xf6   : > { %v477_v39 = vsel %vm476_vm4, %v472_v37, %v474_v38  ;;  %v473_v40 = vsel %vm469_vm5, %v1211_v28, 16  ;;  %v475_v41 = vsel %vm471_vm6, %v351_v33, 16  ;;  %vm639_vm4 = vcmp.lt.s32.totalorder %v349_v23, 256 }
  0xf7   : > { %v478_v42 = vrot.slane %v477_v39, 4  ;;  %vm487_vm7 = vcmp.lt.s32.totalorder %v473_v40, %v475_v41  ;;  %vm671_vm5 = vcmask 7168  }
  0xf8   : > { %v488_v43 = vsel %vm487_vm7, %v473_v40, %v475_v41 }
  0xf9   : > { %vm479_vm8 = vcmp.lt.s32.totalorder %v477_v39, %v478_v42  ;;  %v489_v44 = vrot.slane %v488_v43, 4 }
  0xfa   : > { %v480_v45 = vsel %vm479_vm8, %v477_v39, %v478_v42 }
  0xfb   : > { %v481_v46 = vrot.slane %v480_v45, 2  ;;  %vm490_vm9 = vcmp.lt.s32.totalorder %v488_v43, %v489_v44 }
  0xfc   : > { %v491_v49 = vsel %vm490_vm9, %v488_v43, %v489_v44 }
  0xfd   : > { %v492_v50 = vrot.slane %v491_v49, 2  ;;  %vm482_vm10 = vcmp.lt.s32.totalorder %v480_v45, %v481_v46 }
  0xfe   : > { %v483_v51 = vsel %vm482_vm10, %v480_v45, %v481_v46 }
  0xff   : > { %vm493_vm11 = vcmp.lt.s32.totalorder %v491_v49, %v492_v50  ;;  %v484_v52 = vrot.slane %v483_v51, 1 }
 0x100   : > { %v494_v54 = vsel %vm493_vm11, %v491_v49, %v492_v50 }
 0x101   : > { %v495_v55 = vrot.slane %v494_v54, 1  ;;  %vm485_vm12 = vcmp.lt.s32.totalorder %v483_v51, %v484_v52 }
 0x102   : > { %v486_v56 = vsel %vm485_vm12, %v483_v51, %v484_v52 }
 0x103   : > { %vm496_vm13 = vcmp.lt.s32.totalorder %v494_v54, %v495_v55  ;;  %vm500_vm14 = vcmp.eq.s32.totalorder %v351_v33, %v486_v56  ;;  %vm498_vm15 = vcmp.eq.s32.totalorder %v1211_v28, %v486_v56 }
 0x104   : > { %v497_v58 = vsel %vm496_vm13, %v494_v54, %v495_v55  ;;  %v921_v62 = vsel %vm498_vm15, 1.0, %v1080_v1  ;;  %v923_v0 = vsel %vm500_vm14, 1.0, %v1080_v1 }
 0x105   : > { %vm501_vm1 = vcmp.eq.s32.totalorder %v351_v33, %v497_v58  ;;  %v622_v59 = vcombine.low %v486_v56, %v497_v58  ;;  %vm499_vm2 = vcmp.eq.s32.totalorder %v1211_v28, %v497_v58 }
 0x106   : > { %v924_v60 = vsel %vm501_vm1, 1.0, %v1080_v1  ;;  %925 = vmatprep.subr.msk.mxu1 %vm501_vm1, %v1083_v61  ;;  %v922_v63 = vsel %vm499_vm2, 1.0, %v1080_v1 }
 0x107   : > { %926 = vmatpush1.msk.msra.mxu1 %vm500_vm14, %v1083_v61  ;;  %v629_v2 = vrot.slane %v622_v59, %v628_v57  ;;  %v661_v4 = vadd.f32 %v922_v63, %v921_v62  ;;  %v664_v5 = vadd.f32 %v924_v60, %v923_v0 }
 0x108   : > { %927 = vmatprep.subr.msk.mxu1 %vm499_vm2, %v1083_v61 }
 0x109   : > { %928 = vmatpush1.msk.msra.mxu1 %vm498_vm15, %v1083_v61  ;;  %662 = vadd.xlane.f32.xlu1 %v661_v4  ;;  %v636_v6 = vrot.slane %v629_v2, %v628_v57 }
 0x10a   : > { %929 = vmatmul.mubr.msk.f32.vlgmr.msra.gmra.mxu1 %vm542_vm3, %v526_v3 }
 0x10b   : > { %641 = vst.msk [vmem:[%s287_s12] sm:$0x3] %vm639_vm4, %v636_v6 }
 0x192   : > { %v663_v1 = vpop.xlane.xlu1 %662 }
 0x193   : > { %672 = vst.msk [vmem:[%s1238_s17] sm:$0xff] %vm671_vm5, %v663_v1 }
 0x1ca   : > { %v612_v7 = vpop.f32.mrf.mxu1 }
 0x1cb   : > { %v643_v10 = vsub.f32 %v612_v7, %v1199_v8 }
 0x1cc   : > { %v614_v11 = vpop.f32.mrf.mxu1 }
 0x1cd   : > { %v645_v12 = vmul.f32 %v643_v10, %v643_v10  ;;  %v619_v13 = vcombine.low %v612_v7, %v614_v11  ;;  %v644_v14 = vsub.f32 %v614_v11, %v1203_v9 }
 0x1cf   : > { %621 = vst [vmem:[%s325_s27] sm:$0xff] %v619_v13  ;;  %v646_v15 = vmul.f32 %v644_v14, %v644_v14  ;;  %v647_v16 = vsel %vm372_vm0, %v645_v12, 0.0  ;;  %s1008_s27 = scalar_lea.vmem %s1007_s20, 64 }
 0x1d0   : > { %p1010_p2 = scmp.lt.s32.totalorder %s1008_s27, %s1002_s16 }
 0x1d1   : > { %v648_v17 = vsel %vm372_vm0, %v646_v15, 0.0 }
 0x1d2   : > { %v649_v18 = vadd.f32 %v648_v17, %v647_v16  ;;  %p1011_p3 = por %p1010_p2, %p1009_p1 }
 0x1d4   : > { %650 = vadd.xlane.f32.xlu0 %v649_v18  ;;  %p1012_p5 = pnand %p1011_p3, %p1005_p0 }
 0x1d8   : > { %665 = vadd.xlane.f32.xlu0 %v664_v5 }
 0x1d9   : > { %1015 = shalt.err (!%p1012_p5)
}
 0x1da   : > { %s1016_s24 = scalar_lea.hbm %s717_s13, 32  ;;  %s1020_s28 = scalar_lea.hbm %s1301_s4, 64 }
 0x1db   : > { %p1017_p6 = scmp.ne.s32.totalorder %s717_s13, %s1016_s24  ;;  %p1021_p10 = scmp.lt.s32.totalorder %s717_s13, %s1301_s4 }
 0x1dc   : > { %p1022_p11 = scmp.lt.s32.totalorder %s1020_s28, %s1016_s24 }
 0x1dd   : > { %p1018_p7 = pnand %p1017_p6, %p1160_p4 }
 0x1de   : > { %p1023_p12 = por %p1022_p11, %p1021_p10 }
 0x1df   : > { %p1019_p9 = pneg %p1018_p7 }
 0x1e1   : > { %p1024_p13 = pnand %p1023_p12, %p1019_p9 }
 0x1e3   : > { %1027 = shalt.err (!%p1024_p13)
}
 0x1e4   : > { %941 = dma.vmem_to_hbm [thread:$0]  (%p1160_p4), %s720_s30, 32, %s717_s13, %s684_s14   ;;  %vm669_vm0 = vcmask 0  }
 0x1e5   : > { %s333_s20 = scalar_lea.vmem %s1302_s5, %s1185_s15 }
 0x25d   : > { %v651_v8 = vpop.xlane.xlu0 %650 }
 0x25e   : > { %v652_v9 = vrot.slane %v651_v8, 4 }
 0x260   : > { %v653_v19 = vadd.f32 %v652_v9, %v651_v8 }
 0x261   : > { %v666_v20 = vpop.xlane.xlu0 %665 }
 0x262   : > { %v654_v21 = vrot.slane %v653_v19, 2  ;;  %673 = vst.msk [vmem:[%s1238_s17 + $0x8] sm:$0xff] %vm671_vm5, %v666_v20 }
 0x264   : > { %v655_v22 = vadd.f32 %v654_v21, %v653_v19 }
 0x266   : > { %v656_v23 = vrot.slane %v655_v22, 1 }
 0x268   : > { %v657_v24 = vadd.f32 %v656_v23, %v655_v22 }
 0x26a   : > { %939 = vpush %v657_v24 }
 0x29b   : > { %s940_s7 = spop %939 }
 0x29c   : > { %v659_v25 = vstv %s940_s7 }
 0x29d   : > { %670 = vst.msk [vmem:[%s333_s20] sm:$0x1] %vm669_vm0, %v659_v25 }
 0x29e PF: > { %p947_p4 = scmp.ge.s32.totalorder %s1078_s26, 2  ;;  %s749_s30 = sand.u32 1, %s1058_s21  }
 0x29f   : > { %s750_s17 = scalar_lea.sflag [#allocation3], %s749_s30 }
 0x2a0   : > { %p944_p0 = pnand %p947_p4, %p1167_p8 }
 0x2a2   : > { %p945_p1 = pneg %p944_p0 }
 0x2a4   : > { %1053 = dma.done.wait (%p945_p1), %s750_s17, 32  }
 0x2a5   : > { %1055 = vsyncadd (%p945_p1), %s750_s17, 4294967264  ;;  %s20_s26 = sadd.s32 1, %s1078_s26   ;;  %s1306_s21 = smov %s1062_s22 }
 0x2a6   : > { %p17_p2 = scmp.ge.s32.totalorder %s20_s26, 4   ;;  %s1307_s22 = smov %s1066_s23 }
 0x2a7   : > { %s1308_s23 = smov %s1173_s10  ;;  %s1309_s24 = smov %s1074_s25 }
 0x2a8   : > { %s1310_s25 = smov %s1312_s29  ;;  %19 = sbr.rel (!%p17_p2) target bundleno = 4 (0x4), region = 103 }
 0x2ad   :  { %776 = vsyncpa [#allocation3], 1 }
 0x2ae   :  { %778 = vsyncpa [#allocation3 + $0x1], 1 }

</bundles_post_ra>
